<compile_context>
chip_gen: v7x
topology: tpu7x:2x2x1
jax: 0.10.0
libtpu: 0.0.40
codegen_flags: <defaults>
</compile_context>

<pallas_src>
import math

import jax
import jax.numpy as jnp
from jax.experimental import pallas as pl
from jax.experimental.pallas import tpu as pltpu


def _round_up(x, m):
    return ((x + m - 1) // m) * m


def mlp_kernel(x_ref, w1_ref, b1_ref, w2_ref, b2_ref, o_ref, acc_ref):
    k = pl.program_id(1)

    @pl.when(k == 0)
    def _():
        acc_ref[...] = jnp.zeros_like(acc_ref)

    # First linear layer: accumulate x_tile @ W1_k_slab on the MXU (f32 acc).
    acc_ref[...] += jnp.dot(x_ref[...], w1_ref[...],
                            preferred_element_type=jnp.float32)

    @pl.when(k == pl.num_programs(1) - 1)
    def _():
        h = acc_ref[...] + b1_ref[...]        # (tm, M) + (1, M) broadcast, f32
        h = jnp.maximum(h, 0.1 * h)           # LeakyReLU(0.1), single select
        out = jnp.dot(h.astype(w2_ref.dtype), w2_ref[...],
                      preferred_element_type=jnp.float32)
        o_ref[...] = (out + b2_ref[...]).astype(o_ref.dtype)


def mlp_forward(x, w1, b1, w2, b2, *, tm=256, tk=None, compute_dtype=None,
                vmem_limit_bytes=None):
    """x: (B, F); w1: (F, M); b1: (1, M); w2: (M, O); b2: (1, O) -> (B, O) f32.

    Weights are stored (in_dim, out_dim), i.e. transposed vs PyTorch's
    nn.Linear (out, in), so the kernel does plain x @ W on the MXU.
    """
    B, F = x.shape
    M = w1.shape[1]
    O = w2.shape[1]
    out_dtype = jnp.float32

    # ---- tile selection --------------------------------------------------
    if B < tm:                                 # tiny-batch fallback
        tm = max(8, _round_up(B, 8))
    if tk is None:
        w_dsize = 2 if compute_dtype == jnp.bfloat16 else x.dtype.itemsize
        budget = 24 * 1024 * 1024              # keep 2x-buffered W1 slab well under VMEM
        if 2 * F * M * w_dsize <= budget:
            tk = F                             # single K step (fully fused)
        else:
            tk = 512
            while tk > 128 and 2 * tk * M * w_dsize > budget:
                tk //= 2

    B_pad = _round_up(B, tm)
    F_pad = _round_up(F, tk)
    O_pad = _round_up(O, 128)                  # lane-dense output

    # ---- dtype handling ----------------------------------------------------
    if compute_dtype is not None:
        x = x.astype(compute_dtype)
        w1 = w1.astype(compute_dtype)
        w2 = w2.astype(compute_dtype)
    b1 = b1.astype(jnp.float32)
    b2 = b2.astype(jnp.float32)

    # ---- zero padding (batch, K, output lanes) -----------------------------
    if B_pad != B or F_pad != F:
        x = jnp.pad(x, ((0, B_pad - B), (0, F_pad - F)))
    if F_pad != F:
        w1 = jnp.pad(w1, ((0, F_pad - F), (0, 0)))
    if O_pad != O:
        w2 = jnp.pad(w2, ((0, 0), (0, O_pad - O)))
        b2 = jnp.pad(b2, ((0, 0), (0, O_pad - O)))

    grid = (B_pad // tm, F_pad // tk)

    out = pl.pallas_call(
        mlp_kernel,
        out_shape=jax.ShapeDtypeStruct((B_pad, O_pad), out_dtype),
        grid_spec=pltpu.PrefetchScalarGridSpec(
            num_scalar_prefetch=0,
            grid=grid,
            in_specs=[
                pl.BlockSpec((tm, tk), lambda i, k: (i, k)),     # x tile
                pl.BlockSpec((tk, M), lambda i, k: (k, 0)),      # W1 K-slab
                pl.BlockSpec((1, M), lambda i, k: (0, 0)),       # b1 (resident)
                pl.BlockSpec((M, O_pad), lambda i, k: (0, 0)),   # W2 (resident)
                pl.BlockSpec((1, O_pad), lambda i, k: (0, 0)),   # b2 (resident)
            ],
            out_specs=pl.BlockSpec((tm, O_pad), lambda i, k: (i, 0)),
            scratch_shapes=[pltpu.VMEM((tm, M), jnp.float32)],   # f32 accumulator
        ),
        compiler_params=pltpu.CompilerParams(
            dimension_semantics=("parallel", "arbitrary"),
            vmem_limit_bytes=vmem_limit_bytes),
    )(x, w1, b1, w2, b2)

    return out[:B, :O]


def init_linear(key, in_dim, out_dim, dtype=jnp.float32):
    # Matches PyTorch nn.Linear default init: U(-1/sqrt(fan_in), 1/sqrt(fan_in))
    kw, kb = jax.random.split(key)
    bound = 1.0 / math.sqrt(in_dim)
    # Stored as (in_dim, out_dim): transposed relative to PyTorch's (out, in).
    w = jax.random.uniform(kw, (in_dim, out_dim), dtype, -bound, bound)
    b = jax.random.uniform(kb, (1, out_dim), dtype, -bound, bound)
    return w, b


def reference_mlp(x, w1, b1, w2, b2):
    h = x @ w1 + b1
    h = jnp.where(h > 0, h, 0.1 * h)
    return h @ w2 + b2


# TODO(synk): the with_bn=True (BatchNorm1d) configuration of the PyTorch
# module is not implemented; the default path (Identity + LeakyReLU) is.

if __name__ == "__main__":
    feature_dim, mid_dim, output_dim = 128, 128, 64

    key = jax.random.PRNGKey(0)
    kx, k1, k2, kx2 = jax.random.split(key, 4)

    w1, b1 = init_linear(k1, feature_dim, mid_dim)
    w2, b2 = init_linear(k2, mid_dim, output_dim)

    # Small batch (module-default sizes): exercises the tiny-batch fallback.
    x_small = jax.random.normal(kx, (8, feature_dim), jnp.float32)
    out_small = jax.block_until_ready(mlp_forward(x_small, w1, b1, w2, b2))
    ref_small = reference_mlp(x_small, w1, b1, w2, b2)
    assert out_small.shape == (8, output_dim)
    assert jnp.allclose(out_small, ref_small, atol=1e-4, rtol=1e-4)

    # Larger, non-tile-multiple batch: exercises tm=256 tiling, batch padding
    # and lane-dense (64 -> 128) output padding; grid=(2, 1) so both v7x cores
    # get a step.
    x_big = jax.random.normal(kx2, (300, feature_dim), jnp.float32)
    out_big = jax.block_until_ready(mlp_forward(x_big, w1, b1, w2, b2))
    ref_big = reference_mlp(x_big, w1, b1, w2, b2)
    assert out_big.shape == (300, output_dim)
    assert jnp.allclose(out_big, ref_big, atol=1e-4, rtol=1e-4)

    # bf16 compute path (v6e/v7x MXU peak), f32 accumulation -> loose tolerance.
    out_bf16 = jax.block_until_ready(
        mlp_forward(x_big, w1, b1, w2, b2, compute_dtype=jnp.bfloat16))
    assert out_bf16.shape == (300, output_dim)
    assert jnp.allclose(out_bf16, ref_big, atol=1e-1, rtol=1e-1)

    print("KERNEL_OK")
</pallas_src>

<mosaic_0001>
module attributes {stable_mosaic.version = 11 : i64} {
  func.func @mlp_kernel(%arg0: i32, %arg1: i32, %arg2: memref<8x128xf32, #tpu.memory_space<vmem>>, %arg3: memref<128x128xf32, #tpu.memory_space<vmem>>, %arg4: memref<1x128xf32, #tpu.memory_space<vmem>>, %arg5: memref<128x128xf32, #tpu.memory_space<vmem>>, %arg6: memref<1x128xf32, #tpu.memory_space<vmem>>, %arg7: memref<8x128xf32, #tpu.memory_space<vmem>>, %arg8: memref<8x128xf32, #tpu.memory_space<vmem>>) attributes {dimension_semantics = [#tpu.dimension_semantics<parallel>, #tpu.dimension_semantics<arbitrary>], iteration_bounds = array<i64: 1, 1>, scalar_prefetch = 0 : i64, scratch_operands = 1 : i64, tpu.core_type = #tpu.core_type<tc>, window_params = [{transform_indices = @transform_0, window_bounds = array<i64: 8, 128>}, {transform_indices = @transform_1, window_bounds = array<i64: 128, 128>}, {pipeline_mode = #tpu.pipeline_mode<synchronous>, transform_indices = @transform_2, window_bounds = array<i64: 1, 128>}, {pipeline_mode = #tpu.pipeline_mode<synchronous>, transform_indices = @transform_3, window_bounds = array<i64: 128, 128>}, {pipeline_mode = #tpu.pipeline_mode<synchronous>, transform_indices = @transform_4, window_bounds = array<i64: 1, 128>}, {transform_indices = @transform_5, window_bounds = array<i64: 8, 128>}]} {
    %c0_i32 = arith.constant 0 : i32
    %0 = arith.cmpi eq, %arg1, %c0_i32 : i32
    %1 = arith.extui %0 : i1 to i32
    %c0_i32_0 = arith.constant 0 : i32
    %2 = arith.cmpi ne, %1, %c0_i32_0 : i32
    scf.if %2 {
      %cst_10 = arith.constant 0.000000e+00 : f32
      %12 = vector.broadcast %cst_10 : f32 to vector<8x128xf32>
      %c0_11 = arith.constant 0 : index
      %c0_12 = arith.constant 0 : index
      %13 = vector.load %arg8[%c0_11, %c0_12] : memref<8x128xf32, #tpu.memory_space<vmem>>, vector<8x128xf32>
      tpu.vector_store %arg8[%c0_11, %c0_12], %12 {strides = array<i32>} : memref<8x128xf32, #tpu.memory_space<vmem>>, vector<8x128xf32>,
    } else {
    }
    %c0 = arith.constant 0 : index
    %c0_1 = arith.constant 0 : index
    %3 = vector.load %arg8[%c0, %c0_1] : memref<8x128xf32, #tpu.memory_space<vmem>>, vector<8x128xf32>
    %c0_2 = arith.constant 0 : index
    %c0_3 = arith.constant 0 : index
    %4 = vector.load %arg2[%c0_2, %c0_3] : memref<8x128xf32, #tpu.memory_space<vmem>>, vector<8x128xf32>
    %c0_4 = arith.constant 0 : index
    %c0_5 = arith.constant 0 : index
    %5 = vector.load %arg3[%c0_4, %c0_5] : memref<128x128xf32, #tpu.memory_space<vmem>>, vector<128x128xf32>
    %cst = arith.constant dense<0.000000e+00> : vector<8x128xf32>
    %6 = tpu.matmul %4, %5, %cst {dimension_numbers = #tpu.dot_dimension_numbers<[1], [0], [0], [1], [0, 0, 1, 1], [], []>} : vector<8x128xf32>, vector<128x128xf32>, vector<8x128xf32> -> vector<8x128xf32>
    %7 = arith.addf %3, %6 : vector<8x128xf32>
    %c0_6 = arith.constant 0 : index
    %c0_7 = arith.constant 0 : index
    %8 = vector.load %arg8[%c0_6, %c0_7] : memref<8x128xf32, #tpu.memory_space<vmem>>, vector<8x128xf32>
    tpu.vector_store %arg8[%c0_6, %c0_7], %7 {strides = array<i32>} : memref<8x128xf32, #tpu.memory_space<vmem>>, vector<8x128xf32>,
    %c0_i32_8 = arith.constant 0 : i32
    %9 = arith.cmpi eq, %arg1, %c0_i32_8 : i32
    %10 = arith.extui %9 : i1 to i32
    %c0_i32_9 = arith.constant 0 : i32
    %11 = arith.cmpi ne, %10, %c0_i32_9 : i32
    scf.if %11 {
      %c0_10 = arith.constant 0 : index
      %c0_11 = arith.constant 0 : index
      %12 = vector.load %arg8[%c0_10, %c0_11] : memref<8x128xf32, #tpu.memory_space<vmem>>, vector<8x128xf32>
      %c0_12 = arith.constant 0 : index
      %c0_13 = arith.constant 0 : index
      %13 = vector.load %arg4[%c0_12, %c0_13] : memref<1x128xf32, #tpu.memory_space<vmem>>, vector<1x128xf32>
      %14 = vector.broadcast %13 : vector<1x128xf32> to vector<8x128xf32>
      %15 = arith.addf %12, %14 : vector<8x128xf32>
      %cst_14 = arith.constant 1.000000e-01 : f32
      %16 = vector.broadcast %cst_14 : f32 to vector<8x128xf32>
      %17 = arith.mulf %16, %15 : vector<8x128xf32>
      %18 = arith.maximumf %15, %17 : vector<8x128xf32>
      %c0_15 = arith.constant 0 : index
      %c0_16 = arith.constant 0 : index
      %19 = vector.load %arg5[%c0_15, %c0_16] : memref<128x128xf32, #tpu.memory_space<vmem>>, vector<128x128xf32>
      %cst_17 = arith.constant dense<0.000000e+00> : vector<8x128xf32>
      %20 = tpu.matmul %18, %19, %cst_17 {dimension_numbers = #tpu.dot_dimension_numbers<[1], [0], [0], [1], [0, 0, 1, 1], [], []>} : vector<8x128xf32>, vector<128x128xf32>, vector<8x128xf32> -> vector<8x128xf32>
      %c0_18 = arith.constant 0 : index
      %c0_19 = arith.constant 0 : index
      %21 = vector.load %arg6[%c0_18, %c0_19] : memref<1x128xf32, #tpu.memory_space<vmem>>, vector<1x128xf32>
      %22 = vector.broadcast %21 : vector<1x128xf32> to vector<8x128xf32>
      %23 = arith.addf %20, %22 : vector<8x128xf32>
      %c0_20 = arith.constant 0 : index
      %c0_21 = arith.constant 0 : index
      %24 = vector.load %arg7[%c0_20, %c0_21] : memref<8x128xf32, #tpu.memory_space<vmem>>, vector<8x128xf32>
      tpu.vector_store %arg7[%c0_20, %c0_21], %23 {strides = array<i32>} : memref<8x128xf32, #tpu.memory_space<vmem>>, vector<8x128xf32>,
    } else {
    }
    return
  }
  func.func @transform_0(%arg0: i32, %arg1: i32) -> (i32, i32) {
    %c0_i32 = arith.constant 0 : i32
    return %arg0, %arg1 : i32, i32
  }
  func.func @transform_1(%arg0: i32, %arg1: i32) -> (i32, i32) {
    %c0_i32 = arith.constant 0 : i32
    %c0_i32_0 = arith.constant 0 : i32
    return %arg1, %c0_i32 : i32, i32
  }
  func.func @transform_2(%arg0: i32, %arg1: i32) -> (i32, i32) {
    %c0_i32 = arith.constant 0 : i32
    %c0_i32_0 = arith.constant 0 : i32
    %c0_i32_1 = arith.constant 0 : i32
    return %c0_i32, %c0_i32_0 : i32, i32
  }
  func.func @transform_3(%arg0: i32, %arg1: i32) -> (i32, i32) {
    %c0_i32 = arith.constant 0 : i32
    %c0_i32_0 = arith.constant 0 : i32
    %c0_i32_1 = arith.constant 0 : i32
    return %c0_i32, %c0_i32_0 : i32, i32
  }
  func.func @transform_4(%arg0: i32, %arg1: i32) -> (i32, i32) {
    %c0_i32 = arith.constant 0 : i32
    %c0_i32_0 = arith.constant 0 : i32
    %c0_i32_1 = arith.constant 0 : i32
    return %c0_i32, %c0_i32_0 : i32, i32
  }
  func.func @transform_5(%arg0: i32, %arg1: i32) -> (i32, i32) {
    %c0_i32 = arith.constant 0 : i32
    %c0_i32_0 = arith.constant 0 : i32
    return %arg0, %c0_i32 : i32, i32
  }
}

</mosaic_0001>

<bundles_post_ra>
// kernel: tpu_custom_call.1
= control target key start
LH: loop header
LB: loop body
LE: loop exit
PB: predicated region body
PF: predicated region fallthrough
CT: control target
= control target key end

     0   :  { %10 = vsyncpa [#allocation4], 0  ;;  %s651_s0 = inlined_call_operand.hbm [shape: f32[8,128], index: 0, kind: input, shape index: {}]   ;;  %s652_s1 = inlined_call_operand.hbm [shape: f32[128,128], index: 1, kind: input, shape index: {}]   ;;  %s653_s2 = inlined_call_operand.vmem [shape: f32[1,128], index: 2, kind: input, shape index: {}]   ;;  %s654_s3 = inlined_call_operand.hbm [shape: f32[128,128], index: 3, kind: input, shape index: {}]   ;;  %s655_s4 = inlined_call_operand.vmem [shape: f32[1,128], index: 4, kind: input, shape index: {}]   ;;  %s656_s5 = inlined_call_operand.hbm [shape: f32[8,128], index: 5, kind: output, shape index: {}]  }
   0x1   :  { %11 = vsyncpa [#allocation7], 0 }
   0x2   :  { %12 = vsyncpa [#allocation5], 0  ;;  %s536_s18 = smov [#allocation6]   ;;  %s442_s22 = scalar_lea.hbm %s652_s1, 2048 }
   0x3   :  { %s28_s19 = sshll.u32 %s536_s18, 4  ;;  %p443_p0 = scmp.ne.s32.totalorder %s652_s1, %s442_s22  ;;  %s29_s19 = int_to_ptr.vmem [resolvable:$true] %s28_s19 }
   0x4   :  { %p446_p1 = scmp.lt.u32.totalorder %s442_s22, %s652_s1 }
   0x6   :  { %p448_p2 = pnand %p446_p1, %p443_p0 }
   0x8   :  { %451 = shalt.err (!%p448_p2)
}
   0x9   :  { %s452_s27 = scalar_lea.vmem %s29_s19, 2048  ;;  %p457_p4 = scmp.lt.s32.totalorder %s29_s19, %s29_s19 }
   0xa   :  { %p453_p3 = scmp.ne.s32.totalorder %s29_s19, %s452_s27  ;;  %p458_p5 = scmp.lt.s32.totalorder %s452_s27, %s452_s27 }
   0xc   :  { %p459_p6 = por %p458_p5, %p457_p4 }
   0xe   :  { %p460_p7 = pnand %p459_p6, %p453_p3 }
  0x10   :  { %463 = shalt.err (!%p460_p7)
}
  0x11   :  { %s537_s28 = smov 128   ;;  %s538_s29 = smov 8  }
  0x12   :  { %34 = dma.hbm_to_vmem [thread:$0]  %s652_s1, 2048, %s29_s19, [#allocation7], %s537_s28, %s537_s28, %s538_s29  }
  0x13   :  { %s539_s7 = smov [#allocation3]   ;;  %s540_s9 = smov [#allocation8]  }
  0x14   :  { %s19_s8 = sshll.u32 %s539_s7, 4  ;;  %s42_s10 = sshll.u32 %s540_s9, 4  ;;  %s20_s8 = int_to_ptr.vmem [resolvable:$true] %s19_s8  ;;  %s43_s10 = int_to_ptr.vmem [resolvable:$true] %s42_s10 }
  0x15   :  { %s464_s13 = scalar_lea.hbm %s651_s0, 128 }
  0x16   :  { %p465_p8 = scmp.ne.s32.totalorder %s651_s0, %s464_s13  ;;  %p468_p9 = scmp.lt.u32.totalorder %s464_s13, %s651_s0 }
  0x18   :  { %p470_p10 = pnand %p468_p9, %p465_p8 }
  0x1a   :  { %473 = shalt.err (!%p470_p10)
}
  0x1b   :  { %s474_s1 = scalar_lea.vmem %s20_s8, 128  ;;  %p479_p12 = scmp.lt.s32.totalorder %s20_s8, %s20_s8 }
  0x1c   :  { %p475_p11 = scmp.ne.s32.totalorder %s20_s8, %s474_s1  ;;  %p480_p13 = scmp.lt.s32.totalorder %s474_s1, %s474_s1 }
  0x1e   :  { %p481_p0 = por %p480_p13, %p479_p12 }
  0x20   :  { %p482_p1 = pnand %p481_p0, %p475_p11 }
  0x22   :  { %485 = shalt.err (!%p482_p1)
}
  0x23   :  { %22 = dma.hbm_to_vmem [thread:$0]  %s651_s0, 128, %s20_s8, [#allocation4]  }
  0x24   :  { %s486_s22 = scalar_lea.hbm %s654_s3, 2048 }
  0x25   :  { %p487_p2 = scmp.ne.s32.totalorder %s654_s3, %s486_s22  ;;  %p490_p3 = scmp.lt.u32.totalorder %s486_s22, %s654_s3 }
  0x27   :  { %p492_p4 = pnand %p490_p3, %p487_p2 }
  0x29   :  { %495 = shalt.err (!%p492_p4)
}
  0x2a   :  { %s496_s27 = scalar_lea.vmem %s43_s10, 2048  ;;  %p501_p6 = scmp.lt.s32.totalorder %s43_s10, %s43_s10 }
  0x2b   :  { %p497_p5 = scmp.ne.s32.totalorder %s43_s10, %s496_s27  ;;  %p502_p7 = scmp.lt.s32.totalorder %s496_s27, %s496_s27 }
  0x2d   :  { %p503_p8 = por %p502_p7, %p501_p6 }
  0x2f   :  { %p504_p9 = pnand %p503_p8, %p497_p5 }
  0x31   :  { %507 = shalt.err (!%p504_p9)
}
  0x32   :  { %48 = dma.hbm_to_vmem [thread:$0]  %s654_s3, 2048, %s43_s10, [#allocation7], %s537_s28, %s537_s28, %s538_s29  }
  0x33   :  { %530 = dma.done.wait [#allocation4], 128  }
  0x34   :  { %531 = vsyncadd [#allocation4], 4294967168 }
  0x35   :  { %532 = dma.done.wait [#allocation7], 4096  }
  0x36   :  { %533 = vsyncadd [#allocation7], 4294963200  ;;  %v541_v0 = vmov 0.0|0.0   ;;  %vm542_vm0 = vmmov 0   ;;  %v543_v1 = vmov 0.0   ;;  %v67_v2 = vld [vmem:[#allocation6] sm:$0xff] }
  0x37   :  { %385 = vmatprep.subr.bf16.mxu0 %v541_v0  ;;  %347 = vmatprep.mubr.msk.f32.mxu0 %vm542_vm0, %v543_v1  ;;  %v68_v3 = vld [vmem:[#allocation6 + $0x8] sm:$0xff]  ;;  %v69_v4 = vld [vmem:[#allocation6 + $0x10] sm:$0xff]  ;;  %v70_v6 = vld [vmem:[#allocation6 + $0x18] sm:$0xff]  ;;  %s544_s7 = smov [#allocation9]  }
  0x38   :  { %409 = vmatprep.subr.bf16.mxu1 %v541_v0  ;;  %382 = vmatprep.mubr.msk.f32.mxu1 %vm542_vm0, %v543_v1  ;;  %v386_v5 = vpack.c.bf16 %v68_v3, %v67_v2  ;;  %v389_v7 = vpack.c.bf16 %v70_v6, %v69_v4  ;;  %v71_v8 = vld [vmem:[#allocation6 + $0x20] sm:$0xff]  ;;  %v72_v9 = vld [vmem:[#allocation6 + $0x28] sm:$0xff]  ;;  %v171_v12 = vld [vmem:[#allocation8 + $0x10] sm:$0xff]  ;;  %s269_s8 = sshll.u32 %s544_s7, 4  ;;  %s270_s8 = int_to_ptr.vmem [resolvable:$true] %s269_s8 }
  0x39   :  { %v169_v10 = vld [vmem:[#allocation8] sm:$0xff]  ;;  %v170_v11 = vld [vmem:[#allocation8 + $0x8] sm:$0xff]  ;;  %v172_v13 = vld [vmem:[#allocation8 + $0x18] sm:$0xff]  ;;  %v392_v14 = vpack.c.bf16 %v72_v9, %v71_v8  ;;  %s508_s9 = scalar_lea.vmem %s270_s8, 128  ;;  %p513_p11 = scmp.lt.s32.totalorder %s270_s8, %s270_s8 }
  0x3a   :  { %387 = vmatpush3.bf16.msra.mxu0 %v386_v5  ;;  %v410_v15 = vpack.c.bf16 %v170_v11, %v169_v10  ;;  %v73_v16 = vld [vmem:[#allocation6 + $0x30] sm:$0xff]  ;;  %v74_v17 = vld [vmem:[#allocation6 + $0x38] sm:$0xff]  ;;  %v413_v18 = vpack.c.bf16 %v172_v13, %v171_v12  ;;  %v173_v19 = vld [vmem:[#allocation8 + $0x20] sm:$0xff]  ;;  %p509_p10 = scmp.ne.s32.totalorder %s270_s8, %s508_s9  ;;  %p514_p12 = scmp.lt.s32.totalorder %s508_s9, %s508_s9 }
  0x3b   :  { %388 = vmatprep.subr.bf16.mxu0 %v541_v0  ;;  %v174_v20 = vld [vmem:[#allocation8 + $0x28] sm:$0xff]  ;;  %v395_v21 = vpack.c.bf16 %v74_v17, %v73_v16  ;;  %v75_v22 = vld [vmem:[#allocation6 + $0x40] sm:$0xff]  ;;  %v175_v25 = vld [vmem:[#allocation8 + $0x30] sm:$0xff] }
  0x3c   :  { %411 = vmatpush3.bf16.msra.mxu1 %v410_v15  ;;  %v76_v23 = vld [vmem:[#allocation6 + $0x48] sm:$0xff]  ;;  %v416_v24 = vpack.c.bf16 %v174_v20, %v173_v19  ;;  %v176_v26 = vld [vmem:[#allocation8 + $0x38] sm:$0xff]  ;;  %v77_v28 = vld [vmem:[#allocation6 + $0x50] sm:$0xff]  ;;  %p515_p13 = por %p514_p12, %p513_p11 }
  0x3d   :  { %412 = vmatprep.subr.bf16.mxu1 %v541_v0  ;;  %v398_v27 = vpack.c.bf16 %v76_v23, %v75_v22  ;;  %v78_v29 = vld [vmem:[#allocation6 + $0x58] sm:$0xff]  ;;  %v419_v30 = vpack.c.bf16 %v176_v26, %v175_v25  ;;  %v177_v31 = vld [vmem:[#allocation8 + $0x40] sm:$0xff]  ;;  %v178_v32 = vld [vmem:[#allocation8 + $0x48] sm:$0xff] }
  0x3e   :  { %390 = vmatpush3.bf16.msra.mxu0 %v389_v7  ;;  %v401_v33 = vpack.c.bf16 %v78_v29, %v77_v28  ;;  %v79_v34 = vld [vmem:[#allocation6 + $0x60] sm:$0xff]  ;;  %v80_v35 = vld [vmem:[#allocation6 + $0x68] sm:$0xff]  ;;  %v422_v36 = vpack.c.bf16 %v178_v32, %v177_v31  ;;  %v179_v37 = vld [vmem:[#allocation8 + $0x50] sm:$0xff]  ;;  %p516_p0 = pnand %p515_p13, %p509_p10 }
  0x3f   :  { %391 = vmatprep.subr.bf16.mxu0 %v541_v0  ;;  %v180_v38 = vld [vmem:[#allocation8 + $0x58] sm:$0xff]  ;;  %v404_v39 = vpack.c.bf16 %v80_v35, %v79_v34  ;;  %v81_v40 = vld [vmem:[#allocation6 + $0x70] sm:$0xff]  ;;  %v181_v45 = vld [vmem:[#allocation8 + $0x60] sm:$0xff] }
  0x40   :  { %414 = vmatpush3.bf16.msra.mxu1 %v413_v18  ;;  %v82_v41 = vld [vmem:[#allocation6 + $0x78] sm:$0xff]  ;;  %v425_v42 = vpack.c.bf16 %v180_v38, %v179_v37  ;;  %v182_v46 = vld [vmem:[#allocation8 + $0x68] sm:$0xff]  ;;  %v183_v48 = vld [vmem:[#allocation8 + $0x70] sm:$0xff] }
  0x41   :  { %415 = vmatprep.subr.bf16.mxu1 %v541_v0  ;;  %v407_v43 = vpack.c.bf16 %v82_v41, %v81_v40  ;;  %v66_v44 = vld [vmem:[#allocation3] sm:$0xff]  ;;  %v428_v47 = vpack.c.bf16 %v182_v46, %v181_v45 }
  0x42   :  { %393 = vmatpush3.bf16.msra.mxu0 %v392_v14  ;;  %v184_v49 = vld [vmem:[#allocation8 + $0x78] sm:$0xff] }
  0x43   :  { %394 = vmatprep.subr.bf16.mxu0 %v541_v0  ;;  %v431_v50 = vpack.c.bf16 %v184_v49, %v183_v48  ;;  %v279_v51 = vld [vmem:[%s653_s2] ss:$0 sm:$0xff] }
  0x44   :  { %417 = vmatpush3.bf16.msra.mxu1 %v416_v24  ;;  %v280_v57 = vld [vmem:[%s655_s4] ss:$0 sm:$0xff] }
  0x45   :  { %418 = vmatprep.subr.bf16.mxu1 %v541_v0 }
  0x46   :  { %396 = vmatpush3.bf16.msra.mxu0 %v395_v21 }
  0x47   :  { %397 = vmatprep.subr.bf16.mxu0 %v541_v0 }
  0x48   :  { %420 = vmatpush3.bf16.msra.mxu1 %v419_v30 }
  0x49   :  { %421 = vmatprep.subr.bf16.mxu1 %v541_v0 }
  0x4a   :  { %399 = vmatpush3.bf16.msra.mxu0 %v398_v27 }
  0x4b   :  { %400 = vmatprep.subr.bf16.mxu0 %v541_v0 }
  0x4c   :  { %423 = vmatpush3.bf16.msra.mxu1 %v422_v36 }
  0x4d   :  { %424 = vmatprep.subr.bf16.mxu1 %v541_v0 }
  0x4e   :  { %402 = vmatpush3.bf16.msra.mxu0 %v401_v33 }
  0x4f   :  { %403 = vmatprep.subr.bf16.mxu0 %v541_v0 }
  0x50   :  { %426 = vmatpush3.bf16.msra.mxu1 %v425_v42 }
  0x51   :  { %427 = vmatprep.subr.bf16.mxu1 %v541_v0 }
  0x52   :  { %405 = vmatpush3.bf16.msra.mxu0 %v404_v39 }
  0x53   :  { %406 = vmatprep.subr.bf16.mxu0 %v541_v0 }
  0x54   :  { %429 = vmatpush3.bf16.msra.mxu1 %v428_v47 }
  0x55   :  { %430 = vmatprep.subr.bf16.mxu1 %v541_v0 }
  0x56   :  { %408 = vmatpush3.bf16.msra.mxu0 %v407_v43 }
  0x58   :  { %432 = vmatpush3.bf16.msra.mxu1 %v431_v50 }
  0x59   :  { %348 = vmatmul.mubr.f32.vlgmr.msra.gmra.mrb[0].mxu0 %v66_v44 }
 0x12c   :  { %v149_v52 = vpop.f32.mrb[0].mxu0 }
 0x12d   :  { %v166_v53 = vadd.f32 %v279_v51, %v149_v52  ;;  %v349_v54 = vpop.f32.mrb[1].mxu0 }
 0x12f   :  { %v167_v55 = vmul.f32 0.1, %v166_v53 }
 0x131   :  { %v168_v56 = vmax.f32 %v166_v53, %v167_v55 }
 0x133   :  { %383 = vmatmul.mubr.f32.vlgmr.msra.gmra.mrb[0].mxu1 %v168_v56 }
 0x206   :  { %v258_v58 = vpop.f32.mrb[0].mxu1 }
 0x207   :  { %v259_v59 = vadd.f32 %v280_v57, %v258_v58  ;;  %v384_v60 = vpop.f32.mrb[1].mxu1 }
 0x209   :  { %262 = vst [vmem:[#allocation9] sm:$0xff] %v259_v59 }
 0x20a   :  { %519 = shalt.err (!%p516_p0)
}
 0x20b   :  { %s520_s11 = scalar_lea.hbm %s656_s5, 128 }
 0x20c   :  { %p521_p1 = scmp.ne.s32.totalorder %s656_s5, %s520_s11  ;;  %p524_p2 = scmp.lt.u32.totalorder %s520_s11, %s656_s5 }
 0x20e   :  { %p526_p3 = pnand %p524_p2, %p521_p1 }
 0x210   :  { %529 = shalt.err (!%p526_p3)
}
 0x211   :  { %272 = dma.vmem_to_hbm [thread:$0]  %s270_s8, 128, %s656_s5, [#allocation5]  }
 0x212   :  { %534 = dma.done.wait [#allocation5], 128  }
 0x213   :  { %535 = vsyncadd [#allocation5], 4294967168 }
 0x214   :  { %276 = vsyncpa [#allocation4], 1 }
 0x215   :  { %277 = vsyncpa [#allocation7], 1 }
 0x216   :  { %278 = vsyncpa [#allocation5], 1 }

</bundles_post_ra>
